<compile_context>
chip_gen: v7x
topology: tpu7x:2x2x1
jax: 0.10.0
libtpu: 0.0.40
codegen_flags: <defaults>
</compile_context>

<pallas_src>
import functools
import math

import jax
import jax.numpy as jnp
from jax.experimental import pallas as pl
from jax.experimental.pallas import tpu as pltpu


def _round_up(x: int, m: int) -> int:
    return ((x + m - 1) // m) * m


def _cdiv(a: int, b: int) -> int:
    return (a + b - 1) // b


def _linear_kernel(x_ref, w_ref, b_ref, o_ref, acc_ref):
    # x_ref: (tm, tk)  w_ref: (tk, tn)  b_ref: (1, tn)
    # o_ref: (tm, tn)  acc_ref: (tm, tn) f32 scratch
    k = pl.program_id(2)

    @pl.when(k == 0)
    def _():
        # Fold the bias into the accumulator init; finalize is then a cast.
        acc_ref[...] = jnp.broadcast_to(
            b_ref[...].astype(jnp.float32), acc_ref.shape
        )

    acc_ref[...] += jnp.dot(
        x_ref[...], w_ref[...], preferred_element_type=jnp.float32
    )

    @pl.when(k == pl.num_programs(2) - 1)
    def _():
        o_ref[...] = acc_ref[...].astype(o_ref.dtype)


def _choose_tiles(B, IN, OUT, comp_itemsize, tm, tn, tk):
    """dtype-/MXU-aware tile selection, sized against the v7x VMEM budget."""
    sub = {4: 8, 2: 16, 1: 32}.get(comp_itemsize, 8)

    if tm is None:
        # Round batch up to a full MXU pass when large enough, else to the
        # dtype's sublane quantum; cap at 512.
        tm = min(512, _round_up(B, 128 if B >= 128 else sub))
    else:
        tm = min(_round_up(tm, sub), _round_up(B, sub))

    if tn is None:
        # Lane-dense output: multiples of 128, or the exact width for tiny layers.
        tn = OUT if OUT < 128 else min(512, _round_up(OUT, 128))
    else:
        tn = OUT if OUT < 128 else min(_round_up(tn, 128), _round_up(OUT, 128))

    K128 = _round_up(IN, 128)
    if tk is not None:
        tk = min(_round_up(tk, 128), K128)
    elif K128 <= 2048:
        tk = IN  # whole reduction in one step: no K padding ever
    else:
        steps = _cdiv(K128, 2048)
        tk = _round_up(_cdiv(K128, steps), 128)  # balanced K tiles, tiny pad

    grid_k = _cdiv(IN, tk)
    # Keep >= 2 parallel (i, j) tiles when K iterates so both v7x TensorCores
    # get work instead of the whole grid collapsing onto one core.
    if _cdiv(B, tm) * _cdiv(OUT, tn) == 1 and grid_k > 1:
        if tn >= 256:
            tn //= 2
        elif tm >= 2 * sub:
            tm = _round_up(tm // 2, sub)
    return tm, tn, tk


@functools.partial(
    jax.jit, static_argnames=("compute_dtype", "force_pallas", "tm", "tn", "tk")
)
def layer_forward(
    x: jax.Array,
    w_t: jax.Array,
    b: jax.Array,
    *,
    compute_dtype=None,
    force_pallas: bool = False,
    tm: int | None = None,
    tn: int | None = None,
    tk: int | None = None,
) -> jax.Array:
    """Pallas implementation of Layer.forward with default constructor args.

    x   : [B, in_features]
    w_t : [in_features, out_features]  (transposed nn.Linear weight)
    b   : [out_features]
    compute_dtype : optional (e.g. jnp.bfloat16) — cast x/W for the MXU while
                    keeping the f32 accumulator; output keeps x.dtype.
    """
    B, IN = x.shape
    K2, OUT = w_t.shape
    assert K2 == IN and b.shape == (OUT,)

    out_dtype = x.dtype
    comp_dtype = jnp.dtype(compute_dtype) if compute_dtype is not None else jnp.dtype(x.dtype)
    comp_isz = comp_dtype.itemsize
    out_isz = jnp.dtype(out_dtype).itemsize

    tm, tn, tk = _choose_tiles(B, IN, OUT, comp_isz, tm, tn, tk)
    grid_m, grid_n, grid_k = _cdiv(B, tm), _cdiv(OUT, tn), _cdiv(IN, tk)
    grid = (grid_m, grid_n, grid_k)
    K_pad = grid_k * tk

    # Tiny problems: a single-tile grid is dominated by launch / pipeline
    # overhead; XLA's fused dot is strictly better there.
    if grid == (1, 1, 1) and not force_pallas:
        y = jnp.dot(
            x.astype(comp_dtype), w_t.astype(comp_dtype),
            preferred_element_type=jnp.float32,
        ) + b.astype(jnp.float32)
        return y.astype(out_dtype)

    xp = x.astype(comp_dtype)
    wp = w_t.astype(comp_dtype)
    # Only the K axis ever needs zero fill (zeros contribute nothing to the
    # reduction); M/N remainders are handled by masked boundary blocks whose
    # garbage only reaches output rows/cols that are never written back.
    if K_pad != IN:
        xp = jnp.pad(xp, ((0, 0), (0, K_pad - IN)))
        wp = jnp.pad(wp, ((0, K_pad - IN), (0, 0)))
    bp = b.reshape(1, OUT).astype(jnp.float32)

    # VMEM budget: double-buffered inputs/outputs + f32 accumulator + headroom,
    # clamped to stay comfortably inside v7x's 64 MiB/TC VMEM.
    vmem_bytes = int(
        2 * (tm * tk + tk * tn) * comp_isz   # x, W (2 pipeline buffers each)
        + 2 * tn * 4                          # bias (2 buffers, f32)
        + 2 * tm * tn * out_isz               # output (2 buffers)
        + tm * tn * 4                         # f32 accumulator scratch
    ) + (8 << 20)
    vmem_bytes = max(min(vmem_bytes, 48 << 20), 16 << 20)

    cost = pl.CostEstimate(
        flops=2 * B * IN * OUT,
        transcendentals=0,
        bytes_accessed=int(
            comp_isz * (B * K_pad * grid_n + K_pad * OUT * grid_m)  # tile re-reads
            + 4 * OUT * grid_m
            + out_isz * B * OUT
        ),
    )

    return pl.pallas_call(
        _linear_kernel,
        out_shape=jax.ShapeDtypeStruct((B, OUT), out_dtype),
        grid_spec=pltpu.PrefetchScalarGridSpec(
            num_scalar_prefetch=0,
            grid=grid,
            in_specs=[
                pl.BlockSpec((tm, tk), lambda i, j, k: (i, k)),
                pl.BlockSpec((tk, tn), lambda i, j, k: (k, j)),
                pl.BlockSpec((1, tn), lambda i, j, k: (0, j)),
            ],
            out_specs=pl.BlockSpec((tm, tn), lambda i, j, k: (i, j)),
            scratch_shapes=[pltpu.VMEM((tm, tn), jnp.float32)],
        ),
        compiler_params=pltpu.CompilerParams(
            dimension_semantics=("parallel", "parallel", "arbitrary"),
            vmem_limit_bytes=vmem_bytes,
        ),
        cost_estimate=cost,
    )(xp, wp, bp)


def init_linear_params(key, in_features: int, out_features: int):
    """Deterministic init matching torch.nn.Linear's default scheme
    (kaiming-uniform weight, uniform bias with bound 1/sqrt(fan_in))."""
    kw, kb = jax.random.split(key)
    bound = 1.0 / math.sqrt(in_features)
    weight = jax.random.uniform(
        kw, (out_features, in_features), jnp.float32, -bound, bound
    )
    bias = jax.random.uniform(kb, (out_features,), jnp.float32, -bound, bound)
    return weight, bias


if __name__ == "__main__":
    key = jax.random.PRNGKey(0)
    k_x, k_p, k_x2, k_p2, k_x3, k_p3 = jax.random.split(key, 6)

    # --- Small shape matching the module's intent: Layer(32, 64), batch 8 ---
    batch, in_features, out_features = 8, 32, 64
    x = jax.random.normal(k_x, (batch, in_features), jnp.float32)
    weight, bias = init_linear_params(k_p, in_features, out_features)
    y_ref = jnp.dot(x, weight.T, precision=jax.lax.Precision.HIGHEST) + bias

    # Pallas path (forced; the heuristic would route this tiny matmul to XLA).
    y = jax.block_until_ready(layer_forward(x, weight.T, bias, force_pallas=True))
    assert y.shape == (batch, out_features)
    assert jnp.allclose(y, y_ref, atol=1e-5, rtol=1e-5), "mismatch (small, pallas)"

    # Auto fallback path for the same tiny problem.
    y_fb = jax.block_until_ready(layer_forward(x, weight.T, bias))
    assert jnp.allclose(y_fb, y_ref, atol=1e-5, rtol=1e-5), "mismatch (small, fallback)"

    # --- Multi-tile shape: partial M/N boundary blocks + 2-step K + K pad ---
    B2, IN2, OUT2 = 600, 2177, 900
    x2 = jax.random.normal(k_x2, (B2, IN2), jnp.float32)
    w2, b2 = init_linear_params(k_p2, IN2, OUT2)
    y2 = jax.block_until_ready(layer_forward(x2, w2.T, b2))
    y2_ref = jnp.dot(x2, w2.T, precision=jax.lax.Precision.HIGHEST) + b2
    assert jnp.allclose(y2, y2_ref, atol=2e-4, rtol=2e-4), "mismatch (tiled shape)"

    # --- Opt-in bf16 compute path (f32 accumulator kept inside the kernel) ---
    B3, IN3, OUT3 = 256, 384, 512
    x3 = jax.random.normal(k_x3, (B3, IN3), jnp.float32)
    w3, b3 = init_linear_params(k_p3, IN3, OUT3)
    y3 = jax.block_until_ready(
        layer_forward(x3, w3.T, b3, compute_dtype=jnp.bfloat16, force_pallas=True)
    )
    y3_ref = (
        jnp.dot(
            x3.astype(jnp.bfloat16), w3.T.astype(jnp.bfloat16),
            preferred_element_type=jnp.float32,
        )
        + b3
    )
    assert jnp.allclose(y3, y3_ref.astype(jnp.float32), atol=2e-2, rtol=2e-2), \
        "mismatch (bf16 compute path)"

    # TODO(synk): in_activation/out_activation/dropout/batch_norm are NullModule
    # (identity) under the default constructor args and are therefore omitted.

    print("KERNEL_OK")
</pallas_src>

<mosaic_0001>
module attributes {stable_mosaic.version = 11 : i64} {
  func.func @_linear_kernel(%arg0: i32, %arg1: i32, %arg2: i32, %arg3: memref<8x32xf32, #tpu.memory_space<vmem>>, %arg4: memref<32x64xf32, #tpu.memory_space<vmem>>, %arg5: memref<1x64xf32, #tpu.memory_space<vmem>>, %arg6: memref<8x64xf32, #tpu.memory_space<vmem>>, %arg7: memref<8x64xf32, #tpu.memory_space<vmem>>) attributes {dimension_semantics = [#tpu.dimension_semantics<parallel>, #tpu.dimension_semantics<parallel>, #tpu.dimension_semantics<arbitrary>], iteration_bounds = array<i64: 1, 1, 1>, scalar_prefetch = 0 : i64, scratch_operands = 1 : i64, tpu.core_type = #tpu.core_type<tc>, window_params = [{transform_indices = @transform_0, window_bounds = array<i64: 8, 32>}, {transform_indices = @transform_1, window_bounds = array<i64: 32, 64>}, {transform_indices = @transform_2, window_bounds = array<i64: 1, 64>}, {transform_indices = @transform_3, window_bounds = array<i64: 8, 64>}]} {
    %c0_i32 = arith.constant 0 : i32
    %0 = arith.cmpi eq, %arg2, %c0_i32 : i32
    %1 = arith.extui %0 : i1 to i32
    %c0_i32_0 = arith.constant 0 : i32
    %2 = arith.cmpi ne, %1, %c0_i32_0 : i32
    scf.if %2 {
      %c0_10 = arith.constant 0 : index
      %c0_11 = arith.constant 0 : index
      %12 = vector.load %arg5[%c0_10, %c0_11] : memref<1x64xf32, #tpu.memory_space<vmem>>, vector<1x64xf32>
      %13 = vector.shape_cast %12 : vector<1x64xf32> to vector<1x64xf32>
      %14 = vector.broadcast %13 : vector<1x64xf32> to vector<8x64xf32>
      %c0_12 = arith.constant 0 : index
      %c0_13 = arith.constant 0 : index
      %15 = vector.load %arg7[%c0_12, %c0_13] : memref<8x64xf32, #tpu.memory_space<vmem>>, vector<8x64xf32>
      tpu.vector_store %arg7[%c0_12, %c0_13], %14 {strides = array<i32>} : memref<8x64xf32, #tpu.memory_space<vmem>>, vector<8x64xf32>,
    } else {
    }
    %c0 = arith.constant 0 : index
    %c0_1 = arith.constant 0 : index
    %3 = vector.load %arg7[%c0, %c0_1] : memref<8x64xf32, #tpu.memory_space<vmem>>, vector<8x64xf32>
    %c0_2 = arith.constant 0 : index
    %c0_3 = arith.constant 0 : index
    %4 = vector.load %arg3[%c0_2, %c0_3] : memref<8x32xf32, #tpu.memory_space<vmem>>, vector<8x32xf32>
    %c0_4 = arith.constant 0 : index
    %c0_5 = arith.constant 0 : index
    %5 = vector.load %arg4[%c0_4, %c0_5] : memref<32x64xf32, #tpu.memory_space<vmem>>, vector<32x64xf32>
    %cst = arith.constant dense<0.000000e+00> : vector<8x64xf32>
    %6 = tpu.matmul %4, %5, %cst {dimension_numbers = #tpu.dot_dimension_numbers<[1], [0], [0], [1], [0, 0, 1, 1], [], []>} : vector<8x32xf32>, vector<32x64xf32>, vector<8x64xf32> -> vector<8x64xf32>
    %7 = arith.addf %3, %6 : vector<8x64xf32>
    %c0_6 = arith.constant 0 : index
    %c0_7 = arith.constant 0 : index
    %8 = vector.load %arg7[%c0_6, %c0_7] : memref<8x64xf32, #tpu.memory_space<vmem>>, vector<8x64xf32>
    tpu.vector_store %arg7[%c0_6, %c0_7], %7 {strides = array<i32>} : memref<8x64xf32, #tpu.memory_space<vmem>>, vector<8x64xf32>,
    %c0_i32_8 = arith.constant 0 : i32
    %9 = arith.cmpi eq, %arg2, %c0_i32_8 : i32
    %10 = arith.extui %9 : i1 to i32
    %c0_i32_9 = arith.constant 0 : i32
    %11 = arith.cmpi ne, %10, %c0_i32_9 : i32
    scf.if %11 {
      %c0_10 = arith.constant 0 : index
      %c0_11 = arith.constant 0 : index
      %12 = vector.load %arg7[%c0_10, %c0_11] : memref<8x64xf32, #tpu.memory_space<vmem>>, vector<8x64xf32>
      %c0_12 = arith.constant 0 : index
      %c0_13 = arith.constant 0 : index
      %13 = vector.load %arg6[%c0_12, %c0_13] : memref<8x64xf32, #tpu.memory_space<vmem>>, vector<8x64xf32>
      tpu.vector_store %arg6[%c0_12, %c0_13], %12 {strides = array<i32>} : memref<8x64xf32, #tpu.memory_space<vmem>>, vector<8x64xf32>,
    } else {
    }
    return
  }
  func.func @transform_0(%arg0: i32, %arg1: i32, %arg2: i32) -> (i32, i32) {
    %c0_i32 = arith.constant 0 : i32
    return %arg0, %arg2 : i32, i32
  }
  func.func @transform_1(%arg0: i32, %arg1: i32, %arg2: i32) -> (i32, i32) {
    %c0_i32 = arith.constant 0 : i32
    return %arg2, %arg1 : i32, i32
  }
  func.func @transform_2(%arg0: i32, %arg1: i32, %arg2: i32) -> (i32, i32) {
    %c0_i32 = arith.constant 0 : i32
    %c0_i32_0 = arith.constant 0 : i32
    return %c0_i32, %arg1 : i32, i32
  }
  func.func @transform_3(%arg0: i32, %arg1: i32, %arg2: i32) -> (i32, i32) {
    %c0_i32 = arith.constant 0 : i32
    return %arg0, %arg1 : i32, i32
  }
}

</mosaic_0001>

<bundles_post_ra>
// kernel: layer_forward.1
= control target key start
LH: loop header
LB: loop body
LE: loop exit
PB: predicated region body
PF: predicated region fallthrough
CT: control target
= control target key end

     0   :  { %8 = vsyncpa [#allocation4], 0  ;;  %s339_s0 = inlined_call_operand.hbm [shape: f32[8,32], index: 0, kind: input, shape index: {}]   ;;  %s340_s1 = inlined_call_operand.hbm [shape: f32[32,64], index: 1, kind: input, shape index: {}]   ;;  %s341_s2 = inlined_call_operand.vmem [shape: f32[1,64], index: 2, kind: input, shape index: {}]   ;;  %s342_s3 = inlined_call_operand.hbm [shape: f32[8,64], index: 3, kind: output, shape index: {}]  }
   0x1   :  { %9 = vsyncpa [#allocation7], 0 }
   0x2   :  { %10 = vsyncpa [#allocation5], 0  ;;  %s262_s12 = smov [#allocation3]   ;;  %s263_s14 = smov [#allocation6]  }
   0x3   :  { %s17_s13 = sshll.u32 %s262_s12, 4  ;;  %s26_s15 = sshll.u32 %s263_s14, 4  ;;  %s18_s13 = int_to_ptr.vmem [resolvable:$true] %s17_s13  ;;  %s290_s15 = int_to_ptr.vmem [resolvable:$true] %s26_s15 }
   0x4   :  { %s190_s18 = scalar_lea.hbm %s339_s0, 128 }
   0x5   :  { %p191_p0 = scmp.ne.s32.totalorder %s339_s0, %s190_s18  ;;  %p194_p1 = scmp.lt.u32.totalorder %s190_s18, %s339_s0 }
   0x7   :  { %p196_p2 = pnand %p194_p1, %p191_p0 }
   0x9   :  { %199 = shalt.err (!%p196_p2)
}
   0xa   :  { %s200_s23 = scalar_lea.vmem %s18_s13, 128  ;;  %p205_p4 = scmp.lt.s32.totalorder %s18_s13, %s18_s13 }
   0xb   :  { %p201_p3 = scmp.ne.s32.totalorder %s18_s13, %s200_s23  ;;  %p206_p5 = scmp.lt.s32.totalorder %s200_s23, %s200_s23 }
   0xd   :  { %p207_p6 = por %p206_p5, %p205_p4 }
   0xf   :  { %p208_p7 = pnand %p207_p6, %p201_p3 }
  0x11   :  { %211 = shalt.err (!%p208_p7)
}
  0x12   :  { %20 = dma.hbm_to_vmem [thread:$0]  %s339_s0, 128, %s18_s13, [#allocation4]  }
  0x13   :  { %s212_s28 = scalar_lea.hbm %s340_s1, 512 }
  0x14   :  { %p213_p8 = scmp.ne.s32.totalorder %s340_s1, %s212_s28  ;;  %p216_p9 = scmp.lt.u32.totalorder %s212_s28, %s340_s1 }
  0x16   :  { %p218_p10 = pnand %p216_p9, %p213_p8 }
  0x18   :  { %221 = shalt.err (!%p218_p10)
}
  0x19   :  { %s222_s6 = scalar_lea.vmem %s290_s15, 512  ;;  %p227_p12 = scmp.lt.s32.totalorder %s290_s15, %s290_s15 }
  0x1a   :  { %p223_p11 = scmp.ne.s32.totalorder %s290_s15, %s222_s6  ;;  %p228_p13 = scmp.lt.s32.totalorder %s222_s6, %s222_s6 }
  0x1c   :  { %p229_p0 = por %p228_p13, %p227_p12 }
  0x1e   :  { %p230_p1 = pnand %p229_p0, %p223_p11 }
  0x20   :  { %233 = shalt.err (!%p230_p1)
}
  0x21   :  { %s264_s0 = smov 128   ;;  %s265_s7 = smov 8  }
  0x22   :  { %32 = dma.hbm_to_vmem [thread:$0]  %s340_s1, 512, %s290_s15, [#allocation7], %s264_s0, %s264_s0, %s265_s7  }
  0x23   :  { %256 = dma.done.wait [#allocation4], 128  }
  0x24   :  { %257 = vsyncadd [#allocation4], 4294967168 }
  0x25   :  { %258 = dma.done.wait [#allocation7], 512  }
  0x26   :  { %259 = vsyncadd [#allocation7], 4294966784  ;;  %v266_v0 = vmov 0.0|0.0   ;;  %vm267_vm0 = vmmov 0   ;;  %v268_v1 = vmov 0.0   ;;  %vm52_vm1 = vcmask 523264  }
  0x27   :  { %176 = vmatprep.subr.bf16.mxu0 %v266_v0  ;;  %173 = vmatprep.mubr.msk.f32.mxu0 %vm267_vm0, %v268_v1  ;;  %v56_v2 = vld [vmem:[#allocation6] sm:$0xff]  ;;  %v57_v3 = vld [vmem:[#allocation6 + $0x8] sm:$0xff]  ;;  %v58_v4 = vld [vmem:[#allocation6 + $0x10] sm:$0xff]  ;;  %vm60_vm2 = vcmask 261120   ;;  %s269_s1 = smov [#allocation8]  }
  0x28   :  { %v177_v5 = vpack.c.bf16 %v57_v3, %v56_v2  ;;  %v59_v6 = vld [vmem:[#allocation6 + $0x18] sm:$0xff]  ;;  %v158_v7 = vld [vmem:[%s341_s2] ss:$0 sm:$0xff]  ;;  %s148_s12 = sshll.u32 %s269_s1, 4  ;;  %s149_s12 = int_to_ptr.vmem [resolvable:$true] %s148_s12 }
  0x29   :  { %53 = vst.msk [vmem:[#allocation2] sm:$0xff] %vm52_vm1, %v158_v7  ;;  %v180_v8 = vpack.c.bf16 %v59_v6, %v58_v4  ;;  %v55_v9 = vld [vmem:[#allocation3] sm:$0xff]  ;;  %s234_s2 = scalar_lea.vmem %s149_s12, 128  ;;  %p239_p3 = scmp.lt.s32.totalorder %s149_s12, %s149_s12 }
  0x2a   :  { %178 = vmatpush3.bf16.msra.mxu0 %v177_v5  ;;  %p235_p2 = scmp.ne.s32.totalorder %s149_s12, %s234_s2  ;;  %p240_p4 = scmp.lt.s32.totalorder %s234_s2, %s234_s2 }
  0x2b   :  { %179 = vmatprep.subr.bf16.mxu0 %v266_v0 }
  0x2c   :  { %p241_p5 = por %p240_p4, %p239_p3 }
  0x2e   :  { %181 = vmatpush3.bf16.msra.mxu0 %v180_v8  ;;  %p242_p6 = pnand %p241_p5, %p235_p2 }
  0x30   :  { %v54_v10 = vld [vmem:[#allocation2] sm:$0xff] }
  0x31   :  { %174 = vmatmul.mubr.msk.f32.vlgmr.msra.gmra.mrb[0].mxu0 %vm60_vm2, %v55_v9 }
 0x104   :  { %v130_v11 = vpop.f32.mrb[0].mxu0 }
 0x105   :  { %v134_v12 = vadd.f32 %v130_v11, %v54_v10  ;;  %v175_v13 = vpop.f32.mrb[1].mxu0 }
 0x107   :  { %136 = vst.msk [vmem:[#allocation2] sm:$0xff] %vm52_vm1, %v134_v12 }
 0x10e   :  { %v140_v14 = vld [vmem:[#allocation2] sm:$0xff] }
 0x10f   :  { %141 = vst.msk [vmem:[#allocation8] sm:$0xff] %vm52_vm1, %v140_v14 }
 0x110   :  { %245 = shalt.err (!%p242_p6)
}
 0x111   :  { %s246_s15 = scalar_lea.hbm %s342_s3, 128 }
 0x112   :  { %p247_p7 = scmp.ne.s32.totalorder %s342_s3, %s246_s15  ;;  %p250_p8 = scmp.lt.u32.totalorder %s246_s15, %s342_s3 }
 0x114   :  { %p252_p9 = pnand %p250_p8, %p247_p7 }
 0x116   :  { %255 = shalt.err (!%p252_p9)
}
 0x117   :  { %151 = dma.vmem_to_hbm [thread:$0]  %s149_s12, 128, %s342_s3, [#allocation5]  }
 0x118   :  { %260 = dma.done.wait [#allocation5], 128  }
 0x119   :  { %261 = vsyncadd [#allocation5], 4294967168 }
 0x11a   :  { %155 = vsyncpa [#allocation4], 1 }
 0x11b   :  { %156 = vsyncpa [#allocation7], 1 }
 0x11c   :  { %157 = vsyncpa [#allocation5], 1 }

</bundles_post_ra>
